<compile_context>
chip_gen: v7x
topology: tpu7x:2x2x1
jax: 0.10.0
libtpu: 0.0.40
codegen_flags: <defaults>
</compile_context>

<pallas_src>
import jax
import jax.numpy as jnp
from jax.experimental import pallas as pl
from jax.experimental.pallas import tpu as pltpu

NEG_SLOPE = 0.2   # nn.LeakyReLU(0.2) in the module
BN_EPS = 1e-5
TILE_CAP = 8192   # lanes per pixel tile (multiple of 128), safe for v7x's 64 MiB VMEM
VMEM_LIMIT = 40 * 1024 * 1024


def _leaky(x):
    # max(x, 0.2*x) == LeakyReLU(0.2): 2 VALU ops per vreg (mul+max), no select.
    return jnp.maximum(x, NEG_SLOPE * x)


def _pre_bn_tile(x, w1b, b1, w2b):
    """d = W2 @ leaky(W1 @ x + b1) for one (c_pad, TILE_P) tile.
    Both GEMMs run on the MXU with bf16 operands, f32 accumulation.  The conv-2 bias b2
    is intentionally omitted: it cancels under training-mode BatchNorm and is replaced by
    b2_eff = -mean(d) in pass 2."""
    xb = x.astype(jnp.bfloat16)
    h1 = jnp.dot(w1b, xb, preferred_element_type=jnp.float32) + b1    # (hidden, TILE_P)
    h1 = _leaky(h1)
    return jnp.dot(w2b, h1.astype(jnp.bfloat16),
                   preferred_element_type=jnp.float32)                # (c2, TILE_P)


def stats_kernel(x_ref, w1_ref, b1_ref, w2_ref, sum_ref, ssq_ref):
    """Pass 1: per-batch, lane-wide (c2, 128) partial sum / sum-of-squares of d."""
    @pl.when(pl.program_id(1) == 0)          # fresh accumulator block per batch index
    def _init():
        sum_ref[...] = jnp.zeros_like(sum_ref)
        ssq_ref[...] = jnp.zeros_like(ssq_ref)

    d = _pre_bn_tile(x_ref[...], w1_ref[...], b1_ref[...], w2_ref[...])
    ncol = d.shape[1] // 128
    s = d[:, 0:128]
    q = s * s
    for j in range(1, ncol):                 # lane-aligned static slices: pure VPU adds
        col = d[:, j * 128:(j + 1) * 128]
        s = s + col
        q = q + col * col
    sum_ref[...] += s
    ssq_ref[...] += q


def apply_kernel(x_ref, w1_ref, b1_ref, w2_ref, b2e_ref, w3e_ref, o_ref):
    """Pass 2: recompute d, apply folded BN (bias shift + scaled projection weights),
    LeakyReLU, and the 1-wide channel reduction."""
    d = _pre_bn_tile(x_ref[...], w1_ref[...], b1_ref[...], w2_ref[...])
    h3 = _leaky(d + b2e_ref[...])            # == leaky(h2 - mean); inv_std folded into w3
    # Conv2d(2*hidden -> 1, bias=False): VPU multiply + XLU channel reduce (XLU is idle).
    o_ref[...] = jnp.sum(w3e_ref[...] * h3, axis=0, keepdims=True)    # (1, TILE_P)


def _plan_pixel_tiles(hw, cap=TILE_CAP):
    """Pick a lane-dense pixel tile (multiple of 128, <= cap) and the padded extent."""
    cols = -(-hw // 128)                     # 128-lane columns needed
    n_tiles = -(-cols // (cap // 128))
    cols_per_tile = -(-cols // n_tiles)
    tile_p = cols_per_tile * 128
    return tile_p, n_tiles, tile_p * n_tiles


def pixmlp_forward(x_nchw, params):
    """x_nchw: (N, C, H, W) float32 -> (N, 1, H, W) float32 (training-mode BatchNorm)."""
    w1, b1, w2, b2, w3 = params              # PyTorch (out, in) orientation; b2 cancels
    n, c, h, w = x_nchw.shape
    hw = h * w
    hidden = w1.shape[0]
    c2 = w2.shape[0]

    tile_p, n_tiles, hw_pad = _plan_pixel_tiles(hw)
    c_pad = -(-c // 8) * 8                   # sublane-align the tiny contraction dim

    # Channels on sublanes, pixels on lanes; zero-pad channels + pixel axis.
    x3 = jnp.pad(x_nchw.reshape(n, c, hw),
                 ((0, 0), (0, c_pad - c), (0, hw_pad - hw)))
    w1b = jnp.pad(w1, ((0, 0), (0, c_pad - c))).astype(jnp.bfloat16)
    w2b = w2.astype(jnp.bfloat16)

    const2 = lambda ni, ti: (0, 0)           # resident-in-VMEM params
    x_spec = pl.BlockSpec((None, c_pad, tile_p), lambda ni, ti: (ni, 0, ti))
    w1_spec = pl.BlockSpec((hidden, c_pad), const2)
    b1_spec = pl.BlockSpec((hidden, 1), const2)
    w2_spec = pl.BlockSpec((c2, hidden), const2)
    col_spec = pl.BlockSpec((c2, 1), const2)
    part_spec = pl.BlockSpec((None, c2, 128), lambda ni, ti: (ni, 0, 0))

    p = n * hw
    p_pad = n * hw_pad
    mm_flops = 2 * p_pad * (c_pad * hidden + hidden * c2)
    weight_bytes = 2 * (hidden * c_pad + c2 * hidden) + 4 * (hidden + 2 * c2)

    # ---- Pass 1: per-batch lane-wide partial sum / sum-of-squares of d.
    sum_d, ssq_d = pl.pallas_call(
        stats_kernel,
        out_shape=(jax.ShapeDtypeStruct((n, c2, 128), jnp.float32),
                   jax.ShapeDtypeStruct((n, c2, 128), jnp.float32)),
        grid=(n, n_tiles),
        in_specs=[x_spec, w1_spec, b1_spec, w2_spec],
        out_specs=(part_spec, part_spec),
        compiler_params=pltpu.CompilerParams(
            dimension_semantics=("parallel", "arbitrary"),
            vmem_limit_bytes=VMEM_LIMIT),
        cost_estimate=pl.CostEstimate(
            flops=mm_flops + 5 * p_pad * c2, transcendentals=0,
            bytes_accessed=4 * p_pad * c_pad + weight_bytes + 8 * n * c2 * 128),
    )(x3, w1b, b1, w2b)

    # ---- Tiny global-statistics math in plain JAX.
    sum_c = jnp.sum(sum_d, axis=(0, 2))      # (c2,)
    ssq_c = jnp.sum(ssq_d, axis=(0, 2))
    if hw_pad != hw:
        # Zero-padded pixels all produce the same constant column d_pad = W2@leaky(b1);
        # subtract its exact contribution instead of masking inside the hot loop.
        d_pad = jnp.dot(w2b, _leaky(b1).astype(jnp.bfloat16),
                        preferred_element_type=jnp.float32)[:, 0]
        n_pad = n * (hw_pad - hw)
        sum_c = sum_c - n_pad * d_pad
        ssq_c = ssq_c - n_pad * d_pad * d_pad

    m0 = sum_c / p                           # mean of d (= mean(h2) - b2)
    var = ssq_c / p - m0 * m0                # == biased Var(h2); b2 offset already removed
    inv_std = jax.lax.rsqrt(var + BN_EPS)
    b2_eff = -m0[:, None]                    # folds both b2 and the BN mean subtraction
    w3_eff = w3 * inv_std[:, None]           # folds the BN scale into the projection

    # ---- Pass 2: recompute d, folded BN + LeakyReLU + projection (fully parallel).
    out3 = pl.pallas_call(
        apply_kernel,
        out_shape=jax.ShapeDtypeStruct((n, 1, hw_pad), jnp.float32),
        grid=(n, n_tiles),
        in_specs=[x_spec, w1_spec, b1_spec, w2_spec, col_spec, col_spec],
        out_specs=pl.BlockSpec((None, 1, tile_p), lambda ni, ti: (ni, 0, ti)),
        compiler_params=pltpu.CompilerParams(
            dimension_semantics=("parallel", "parallel"),
            vmem_limit_bytes=VMEM_LIMIT),
        cost_estimate=pl.CostEstimate(
            flops=mm_flops + 6 * p_pad * c2, transcendentals=0,
            bytes_accessed=4 * p_pad * c_pad + 4 * p_pad + weight_bytes + 8 * c2),
    )(x3, w1b, b1, w2b, b2_eff, w3_eff)

    return out3[:, :, :hw].reshape(n, 1, h, w)


def init_params(key, src_ch, hidden):
    """Deterministic init matching the PyTorch module's shapes/init.
    Conv weights: kaiming_normal_(mode='fan_out', relu) -> N(0, sqrt(2/out_ch)) for 1x1.
    BN gamma=1 / beta=0 are the identity and are folded out. Weights kept (out, in)."""
    k1, k2, k3, kb1, kb2 = jax.random.split(key, 5)
    c2 = 2 * hidden

    def kaiming(k, cout, cin):
        std = (2.0 / cout) ** 0.5            # fan_out = cout * 1 * 1
        return std * jax.random.normal(k, (cout, cin), dtype=jnp.float32)

    w1 = kaiming(k1, hidden, src_ch)         # (hidden, src_ch)
    w2 = kaiming(k2, c2, hidden)             # (2*hidden, hidden)
    w3 = kaiming(k3, 1, c2).T                # stored as a (2*hidden, 1) column
    # PyTorch default Conv2d bias init: U(-1/sqrt(fan_in), 1/sqrt(fan_in)), fan_in = cin.
    b1 = jax.random.uniform(kb1, (hidden, 1), jnp.float32,
                            -1.0 / src_ch ** 0.5, 1.0 / src_ch ** 0.5)
    b2 = jax.random.uniform(kb2, (c2, 1), jnp.float32,
                            -1.0 / hidden ** 0.5, 1.0 / hidden ** 0.5)
    return (w1, b1, w2, b2, w3)


def pixmlp_reference(x_nchw, params):
    """Pure-JAX full-f32 reference of the same forward (PyTorch semantics)."""
    w1, b1, w2, b2, w3 = params
    n, c, h, w = x_nchw.shape
    x2d = jnp.transpose(x_nchw, (0, 2, 3, 1)).reshape(-1, c)    # (P, C)
    h1 = x2d @ w1.T + b1[:, 0]
    h1 = jnp.where(h1 > 0, h1, NEG_SLOPE * h1)
    h2 = h1 @ w2.T + b2[:, 0]
    mean = jnp.mean(h2, axis=0)
    var = jnp.var(h2, axis=0)
    h2n = (h2 - mean) / jnp.sqrt(var + BN_EPS)
    h3 = jnp.where(h2n > 0, h2n, NEG_SLOPE * h2n)
    out = h3 @ w3                                               # (P, 1)
    return jnp.transpose(out.reshape(n, h, w, 1), (0, 3, 1, 2))


if __name__ == "__main__":
    src_ch, hidden = 4, 32
    n, h, w = 2, 16, 16

    key = jax.random.PRNGKey(0)
    kx, kp = jax.random.split(key)
    x = jax.random.normal(kx, (n, src_ch, h, w), dtype=jnp.float32)
    params = init_params(kp, src_ch, hidden)

    out = jax.block_until_ready(jax.jit(pixmlp_forward)(x, params))
    ref = jax.block_until_ready(pixmlp_reference(x, params))

    assert out.shape == (n, 1, h, w), out.shape
    # Kernel uses bf16 MXU operands with f32 accumulation; compare against the full-f32
    # reference relative to the output scale (expected error ~1e-2 of scale or less).
    err = float(jnp.max(jnp.abs(out - ref)))
    scale = max(float(jnp.max(jnp.abs(ref))), 1.0)
    assert err <= 5e-2 * scale, (err, scale)
    print("KERNEL_OK")
</pallas_src>

<mosaic_0001>
module attributes {stable_mosaic.version = 11 : i64} {
  func.func @stats_kernel(%arg0: i32, %arg1: i32, %arg2: memref<1x8x256xf32, #tpu.memory_space<vmem>>, %arg3: memref<32x8xbf16, #tpu.memory_space<vmem>>, %arg4: memref<32x1xf32, #tpu.memory_space<vmem>>, %arg5: memref<64x32xbf16, #tpu.memory_space<vmem>>, %arg6: memref<1x64x128xf32, #tpu.memory_space<vmem>>, %arg7: memref<1x64x128xf32, #tpu.memory_space<vmem>>) attributes {dimension_semantics = [#tpu.dimension_semantics<parallel>, #tpu.dimension_semantics<arbitrary>], iteration_bounds = array<i64: 2, 1>, scalar_prefetch = 0 : i64, scratch_operands = 0 : i64, tpu.core_type = #tpu.core_type<tc>, window_params = [{transform_indices = @transform_0, window_bounds = array<i64: 1, 8, 256>}, {pipeline_mode = #tpu.pipeline_mode<synchronous>, transform_indices = @transform_1, window_bounds = array<i64: 32, 8>}, {pipeline_mode = #tpu.pipeline_mode<synchronous>, transform_indices = @transform_2, window_bounds = array<i64: 32, 1>}, {pipeline_mode = #tpu.pipeline_mode<synchronous>, transform_indices = @transform_3, window_bounds = array<i64: 64, 32>}, {transform_indices = @transform_4, window_bounds = array<i64: 1, 64, 128>}, {transform_indices = @transform_5, window_bounds = array<i64: 1, 64, 128>}]} {
    %c0_i32 = arith.constant 0 : i32
    %0 = arith.cmpi eq, %arg1, %c0_i32 : i32
    %1 = arith.extui %0 : i1 to i32
    %c0_i32_0 = arith.constant 0 : i32
    %2 = arith.cmpi ne, %1, %c0_i32_0 : i32
    scf.if %2 {
      %cst_23 = arith.constant 0.000000e+00 : f32
      %35 = vector.broadcast %cst_23 : f32 to vector<64x128xf32>
      %c0_24 = arith.constant 0 : index
      %c0_25 = arith.constant 0 : index
      %c0_26 = arith.constant 0 : index
      %36 = vector.load %arg6[%c0_24, %c0_25, %c0_26] : memref<1x64x128xf32, #tpu.memory_space<vmem>>, vector<1x64x128xf32>
      %37 = vector.shape_cast %36 : vector<1x64x128xf32> to vector<64x128xf32>
      %38 = vector.shape_cast %35 : vector<64x128xf32> to vector<1x64x128xf32>
      tpu.vector_store %arg6[%c0_24, %c0_25, %c0_26], %38 {strides = array<i32>} : memref<1x64x128xf32, #tpu.memory_space<vmem>>, vector<1x64x128xf32>,
      %cst_27 = arith.constant 0.000000e+00 : f32
      %39 = vector.broadcast %cst_27 : f32 to vector<64x128xf32>
      %c0_28 = arith.constant 0 : index
      %c0_29 = arith.constant 0 : index
      %c0_30 = arith.constant 0 : index
      %40 = vector.load %arg7[%c0_28, %c0_29, %c0_30] : memref<1x64x128xf32, #tpu.memory_space<vmem>>, vector<1x64x128xf32>
      %41 = vector.shape_cast %40 : vector<1x64x128xf32> to vector<64x128xf32>
      %42 = vector.shape_cast %39 : vector<64x128xf32> to vector<1x64x128xf32>
      tpu.vector_store %arg7[%c0_28, %c0_29, %c0_30], %42 {strides = array<i32>} : memref<1x64x128xf32, #tpu.memory_space<vmem>>, vector<1x64x128xf32>,
    } else {
    }
    %c0 = arith.constant 0 : index
    %c0_1 = arith.constant 0 : index
    %c0_2 = arith.constant 0 : index
    %3 = vector.load %arg2[%c0, %c0_1, %c0_2] : memref<1x8x256xf32, #tpu.memory_space<vmem>>, vector<1x8x256xf32>
    %4 = vector.shape_cast %3 : vector<1x8x256xf32> to vector<8x256xf32>
    %c0_3 = arith.constant 0 : index
    %c0_4 = arith.constant 0 : index
    %5 = vector.load %arg3[%c0_3, %c0_4] : memref<32x8xbf16, #tpu.memory_space<vmem>>, vector<32x8xbf16>
    %c0_5 = arith.constant 0 : index
    %c0_6 = arith.constant 0 : index
    %6 = vector.load %arg4[%c0_5, %c0_6] : memref<32x1xf32, #tpu.memory_space<vmem>>, vector<32x1xf32>
    %c0_7 = arith.constant 0 : index
    %c0_8 = arith.constant 0 : index
    %7 = vector.load %arg5[%c0_7, %c0_8] : memref<64x32xbf16, #tpu.memory_space<vmem>>, vector<64x32xbf16>
    %8 = arith.truncf %4 : vector<8x256xf32> to vector<8x256xbf16>
    %cst = arith.constant dense<0.000000e+00> : vector<32x256xf32>
    %9 = tpu.matmul %5, %8, %cst {dimension_numbers = #tpu.dot_dimension_numbers<[1], [0], [0], [1], [0, 0, 1, 1], [], []>} : vector<32x8xbf16>, vector<8x256xbf16>, vector<32x256xf32> -> vector<32x256xf32>
    %10 = vector.broadcast %6 : vector<32x1xf32> to vector<32x256xf32>
    %11 = arith.addf %9, %10 : vector<32x256xf32>
    %cst_9 = arith.constant 2.000000e-01 : f32
    %12 = vector.broadcast %cst_9 : f32 to vector<32x256xf32>
    %13 = arith.mulf %12, %11 : vector<32x256xf32>
    %14 = arith.maximumf %11, %13 : vector<32x256xf32>
    %15 = arith.truncf %14 : vector<32x256xf32> to vector<32x256xbf16>
    %cst_10 = arith.constant dense<0.000000e+00> : vector<64x256xf32>
    %16 = tpu.matmul %7, %15, %cst_10 {dimension_numbers = #tpu.dot_dimension_numbers<[1], [0], [0], [1], [0, 0, 1, 1], [], []>} : vector<64x32xbf16>, vector<32x256xbf16>, vector<64x256xf32> -> vector<64x256xf32>
    %17 = vector.extract_strided_slice %16 {offsets = [0, 0], sizes = [64, 128], strides = [1, 1]} : vector<64x256xf32> to vector<64x128xf32>
    %18 = arith.mulf %17, %17 : vector<64x128xf32>
    %19 = vector.extract_strided_slice %16 {offsets = [0, 128], sizes = [64, 128], strides = [1, 1]} : vector<64x256xf32> to vector<64x128xf32>
    %20 = arith.addf %17, %19 : vector<64x128xf32>
    %21 = arith.mulf %19, %19 : vector<64x128xf32>
    %22 = arith.addf %18, %21 : vector<64x128xf32>
    %c0_11 = arith.constant 0 : index
    %c0_12 = arith.constant 0 : index
    %c0_13 = arith.constant 0 : index
    %23 = vector.load %arg6[%c0_11, %c0_12, %c0_13] : memref<1x64x128xf32, #tpu.memory_space<vmem>>, vector<1x64x128xf32>
    %24 = vector.shape_cast %23 : vector<1x64x128xf32> to vector<64x128xf32>
    %25 = arith.addf %24, %20 : vector<64x128xf32>
    %c0_14 = arith.constant 0 : index
    %c0_15 = arith.constant 0 : index
    %c0_16 = arith.constant 0 : index
    %26 = vector.load %arg6[%c0_14, %c0_15, %c0_16] : memref<1x64x128xf32, #tpu.memory_space<vmem>>, vector<1x64x128xf32>
    %27 = vector.shape_cast %26 : vector<1x64x128xf32> to vector<64x128xf32>
    %28 = vector.shape_cast %25 : vector<64x128xf32> to vector<1x64x128xf32>
    tpu.vector_store %arg6[%c0_14, %c0_15, %c0_16], %28 {strides = array<i32>} : memref<1x64x128xf32, #tpu.memory_space<vmem>>, vector<1x64x128xf32>,
    %c0_17 = arith.constant 0 : index
    %c0_18 = arith.constant 0 : index
    %c0_19 = arith.constant 0 : index
    %29 = vector.load %arg7[%c0_17, %c0_18, %c0_19] : memref<1x64x128xf32, #tpu.memory_space<vmem>>, vector<1x64x128xf32>
    %30 = vector.shape_cast %29 : vector<1x64x128xf32> to vector<64x128xf32>
    %31 = arith.addf %30, %22 : vector<64x128xf32>
    %c0_20 = arith.constant 0 : index
    %c0_21 = arith.constant 0 : index
    %c0_22 = arith.constant 0 : index
    %32 = vector.load %arg7[%c0_20, %c0_21, %c0_22] : memref<1x64x128xf32, #tpu.memory_space<vmem>>, vector<1x64x128xf32>
    %33 = vector.shape_cast %32 : vector<1x64x128xf32> to vector<64x128xf32>
    %34 = vector.shape_cast %31 : vector<64x128xf32> to vector<1x64x128xf32>
    tpu.vector_store %arg7[%c0_20, %c0_21, %c0_22], %34 {strides = array<i32>} : memref<1x64x128xf32, #tpu.memory_space<vmem>>, vector<1x64x128xf32>,
    return
  }
  func.func @transform_0(%arg0: i32, %arg1: i32) -> (i32, i32, i32) {
    %c0_i32 = arith.constant 0 : i32
    %c0_i32_0 = arith.constant 0 : i32
    return %arg0, %c0_i32, %arg1 : i32, i32, i32
  }
  func.func @transform_1(%arg0: i32, %arg1: i32) -> (i32, i32) {
    %c0_i32 = arith.constant 0 : i32
    %c0_i32_0 = arith.constant 0 : i32
    %c0_i32_1 = arith.constant 0 : i32
    return %c0_i32, %c0_i32_0 : i32, i32
  }
  func.func @transform_2(%arg0: i32, %arg1: i32) -> (i32, i32) {
    %c0_i32 = arith.constant 0 : i32
    %c0_i32_0 = arith.constant 0 : i32
    %c0_i32_1 = arith.constant 0 : i32
    return %c0_i32, %c0_i32_0 : i32, i32
  }
  func.func @transform_3(%arg0: i32, %arg1: i32) -> (i32, i32) {
    %c0_i32 = arith.constant 0 : i32
    %c0_i32_0 = arith.constant 0 : i32
    %c0_i32_1 = arith.constant 0 : i32
    return %c0_i32, %c0_i32_0 : i32, i32
  }
  func.func @transform_4(%arg0: i32, %arg1: i32) -> (i32, i32, i32) {
    %c0_i32 = arith.constant 0 : i32
    %c0_i32_0 = arith.constant 0 : i32
    %c0_i32_1 = arith.constant 0 : i32
    return %arg0, %c0_i32, %c0_i32_0 : i32, i32, i32
  }
  func.func @transform_5(%arg0: i32, %arg1: i32) -> (i32, i32, i32) {
    %c0_i32 = arith.constant 0 : i32
    %c0_i32_0 = arith.constant 0 : i32
    %c0_i32_1 = arith.constant 0 : i32
    return %arg0, %c0_i32, %c0_i32_0 : i32, i32, i32
  }
}

module attributes {stable_mosaic.version = 11 : i64} {
  func.func @apply_kernel(%arg0: i32, %arg1: i32, %arg2: memref<1x8x256xf32, #tpu.memory_space<vmem>>, %arg3: memref<32x8xbf16, #tpu.memory_space<vmem>>, %arg4: memref<32x1xf32, #tpu.memory_space<vmem>>, %arg5: memref<64x32xbf16, #tpu.memory_space<vmem>>, %arg6: memref<64x1xf32, #tpu.memory_space<vmem>>, %arg7: memref<64x1xf32, #tpu.memory_space<vmem>>, %arg8: memref<1x1x256xf32, #tpu.memory_space<vmem>>) attributes {dimension_semantics = [#tpu.dimension_semantics<parallel>, #tpu.dimension_semantics<parallel>], iteration_bounds = array<i64: 2, 1>, scalar_prefetch = 0 : i64, scratch_operands = 0 : i64, tpu.core_type = #tpu.core_type<tc>, window_params = [{transform_indices = @transform_0, window_bounds = array<i64: 1, 8, 256>}, {pipeline_mode = #tpu.pipeline_mode<synchronous>, transform_indices = @transform_1, window_bounds = array<i64: 32, 8>}, {pipeline_mode = #tpu.pipeline_mode<synchronous>, transform_indices = @transform_2, window_bounds = array<i64: 32, 1>}, {pipeline_mode = #tpu.pipeline_mode<synchronous>, transform_indices = @transform_3, window_bounds = array<i64: 64, 32>}, {pipeline_mode = #tpu.pipeline_mode<synchronous>, transform_indices = @transform_4, window_bounds = array<i64: 64, 1>}, {pipeline_mode = #tpu.pipeline_mode<synchronous>, transform_indices = @transform_5, window_bounds = array<i64: 64, 1>}, {transform_indices = @transform_6, window_bounds = array<i64: 1, 1, 256>}]} {
    %c0 = arith.constant 0 : index
    %c0_0 = arith.constant 0 : index
    %c0_1 = arith.constant 0 : index
    %0 = vector.load %arg2[%c0, %c0_0, %c0_1] : memref<1x8x256xf32, #tpu.memory_space<vmem>>, vector<1x8x256xf32>
    %1 = vector.shape_cast %0 : vector<1x8x256xf32> to vector<8x256xf32>
    %c0_2 = arith.constant 0 : index
    %c0_3 = arith.constant 0 : index
    %2 = vector.load %arg3[%c0_2, %c0_3] : memref<32x8xbf16, #tpu.memory_space<vmem>>, vector<32x8xbf16>
    %c0_4 = arith.constant 0 : index
    %c0_5 = arith.constant 0 : index
    %3 = vector.load %arg4[%c0_4, %c0_5] : memref<32x1xf32, #tpu.memory_space<vmem>>, vector<32x1xf32>
    %c0_6 = arith.constant 0 : index
    %c0_7 = arith.constant 0 : index
    %4 = vector.load %arg5[%c0_6, %c0_7] : memref<64x32xbf16, #tpu.memory_space<vmem>>, vector<64x32xbf16>
    %5 = arith.truncf %1 : vector<8x256xf32> to vector<8x256xbf16>
    %cst = arith.constant dense<0.000000e+00> : vector<32x256xf32>
    %6 = tpu.matmul %2, %5, %cst {dimension_numbers = #tpu.dot_dimension_numbers<[1], [0], [0], [1], [0, 0, 1, 1], [], []>} : vector<32x8xbf16>, vector<8x256xbf16>, vector<32x256xf32> -> vector<32x256xf32>
    %7 = vector.broadcast %3 : vector<32x1xf32> to vector<32x256xf32>
    %8 = arith.addf %6, %7 : vector<32x256xf32>
    %cst_8 = arith.constant 2.000000e-01 : f32
    %9 = vector.broadcast %cst_8 : f32 to vector<32x256xf32>
    %10 = arith.mulf %9, %8 : vector<32x256xf32>
    %11 = arith.maximumf %8, %10 : vector<32x256xf32>
    %12 = arith.truncf %11 : vector<32x256xf32> to vector<32x256xbf16>
    %cst_9 = arith.constant dense<0.000000e+00> : vector<64x256xf32>
    %13 = tpu.matmul %4, %12, %cst_9 {dimension_numbers = #tpu.dot_dimension_numbers<[1], [0], [0], [1], [0, 0, 1, 1], [], []>} : vector<64x32xbf16>, vector<32x256xbf16>, vector<64x256xf32> -> vector<64x256xf32>
    %c0_10 = arith.constant 0 : index
    %c0_11 = arith.constant 0 : index
    %14 = vector.load %arg6[%c0_10, %c0_11] : memref<64x1xf32, #tpu.memory_space<vmem>>, vector<64x1xf32>
    %15 = vector.broadcast %14 : vector<64x1xf32> to vector<64x256xf32>
    %16 = arith.addf %13, %15 : vector<64x256xf32>
    %cst_12 = arith.constant 2.000000e-01 : f32
    %17 = vector.broadcast %cst_12 : f32 to vector<64x256xf32>
    %18 = arith.mulf %17, %16 : vector<64x256xf32>
    %19 = arith.maximumf %16, %18 : vector<64x256xf32>
    %c0_13 = arith.constant 0 : index
    %c0_14 = arith.constant 0 : index
    %20 = vector.load %arg7[%c0_13, %c0_14] : memref<64x1xf32, #tpu.memory_space<vmem>>, vector<64x1xf32>
    %21 = vector.broadcast %20 : vector<64x1xf32> to vector<64x256xf32>
    %22 = arith.mulf %21, %19 : vector<64x256xf32>
    %cst_15 = arith.constant dense<0.000000e+00> : vector<256xf32>
    %23 = vector.multi_reduction <add>, %22, %cst_15 [0] : vector<64x256xf32> to vector<256xf32>
    %24 = vector.shape_cast %23 : vector<256xf32> to vector<1x256xf32>
    %c0_16 = arith.constant 0 : index
    %c0_17 = arith.constant 0 : index
    %c0_18 = arith.constant 0 : index
    %25 = vector.load %arg8[%c0_16, %c0_17, %c0_18] : memref<1x1x256xf32, #tpu.memory_space<vmem>>, vector<1x1x256xf32>
    %26 = vector.shape_cast %25 : vector<1x1x256xf32> to vector<1x256xf32>
    %27 = vector.shape_cast %24 : vector<1x256xf32> to vector<1x1x256xf32>
    tpu.vector_store %arg8[%c0_16, %c0_17, %c0_18], %27 {strides = array<i32>} : memref<1x1x256xf32, #tpu.memory_space<vmem>>, vector<1x1x256xf32>,
    return
  }
  func.func @transform_0(%arg0: i32, %arg1: i32) -> (i32, i32, i32) {
    %c0_i32 = arith.constant 0 : i32
    %c0_i32_0 = arith.constant 0 : i32
    return %arg0, %c0_i32, %arg1 : i32, i32, i32
  }
  func.func @transform_1(%arg0: i32, %arg1: i32) -> (i32, i32) {
    %c0_i32 = arith.constant 0 : i32
    %c0_i32_0 = arith.constant 0 : i32
    %c0_i32_1 = arith.constant 0 : i32
    return %c0_i32, %c0_i32_0 : i32, i32
  }
  func.func @transform_2(%arg0: i32, %arg1: i32) -> (i32, i32) {
    %c0_i32 = arith.constant 0 : i32
    %c0_i32_0 = arith.constant 0 : i32
    %c0_i32_1 = arith.constant 0 : i32
    return %c0_i32, %c0_i32_0 : i32, i32
  }
  func.func @transform_3(%arg0: i32, %arg1: i32) -> (i32, i32) {
    %c0_i32 = arith.constant 0 : i32
    %c0_i32_0 = arith.constant 0 : i32
    %c0_i32_1 = arith.constant 0 : i32
    return %c0_i32, %c0_i32_0 : i32, i32
  }
  func.func @transform_4(%arg0: i32, %arg1: i32) -> (i32, i32) {
    %c0_i32 = arith.constant 0 : i32
    %c0_i32_0 = arith.constant 0 : i32
    %c0_i32_1 = arith.constant 0 : i32
    return %c0_i32, %c0_i32_0 : i32, i32
  }
  func.func @transform_5(%arg0: i32, %arg1: i32) -> (i32, i32) {
    %c0_i32 = arith.constant 0 : i32
    %c0_i32_0 = arith.constant 0 : i32
    %c0_i32_1 = arith.constant 0 : i32
    return %c0_i32, %c0_i32_0 : i32, i32
  }
  func.func @transform_6(%arg0: i32, %arg1: i32) -> (i32, i32, i32) {
    %c0_i32 = arith.constant 0 : i32
    %c0_i32_0 = arith.constant 0 : i32
    return %arg0, %c0_i32, %arg1 : i32, i32, i32
  }
}

</mosaic_0001>

<bundles_post_ra>
// kernel: pixmlp_forward.2
= control target key start
LH: loop header
LB: loop body
LE: loop exit
PB: predicated region body
PF: predicated region fallthrough
CT: control target
= control target key end

     0   :  { %s834_s18 = smov 0   ;;  %s836_s19 = smov 0   ;;  %s932_s0 = inlined_call_operand.vmem [shape: f32[2,8,256], index: 0, kind: input, shape index: {}]   ;;  %s933_s1 = inlined_call_operand.vmem [shape: bf16[32,8], index: 1, kind: input, shape index: {}]   ;;  %s934_s2 = inlined_call_operand.vmem [shape: f32[32,1], index: 2, kind: input, shape index: {}]   ;;  %s935_s3 = inlined_call_operand.vmem [shape: bf16[64,32], index: 3, kind: input, shape index: {}]   ;;  %s936_s4 = inlined_call_operand.vmem [shape: f32[2,64,128], index: 4, kind: output, shape index: {0}]   ;;  %s937_s5 = inlined_call_operand.vmem [shape: f32[2,64,128], index: 5, kind: output, shape index: {1}]  }
   0x1   :  { %s838_s20 = smov 0  }
   0x2 LB: > { %s28_s21 = sadd.s32 1, %s797_s19  ;;  %p716_p0 = scmp.ge.s32.totalorder %s801_s20, 1  ;;  %s801_s20 = sphi %s838_s20, %s16_s20   ;;  %s797_s19 = sphi %s836_s19, %s939_s19   ;;  %s793_s18 = sphi %s834_s18, %s938_s18  }
   0x3   : > { %p30_p1 = scmp.ge.s32.totalorder %s28_s21, 2  ;;  %p209_p2 = scmp.lt.s32.totalorder %s801_s20, 3 }
   0x5   : > { %s941_s21 = smov (%p30_p1, %s28_s21), 0  ;;  %p210_p3 = pnand %p716_p0, %p209_p2 }
   0x6   : > { %p247_p4 = scmp.lt.s32.totalorder (!%p210_p3), %s793_s18, 1  ;;  %v803_v0 = vmov (!%p210_p3), 0   ;;  %v293_v1 = vld [vmem:[%s934_s2] sm:$0xff] (!%p210_p3)  ;;  %v294_v2 = vld [vmem:[%s934_s2 + $0x8] sm:$0xff] (!%p210_p3)  ;;  %v295_v3 = vld [vmem:[%s934_s2 + $0x10] sm:$0xff] (!%p210_p3)  ;;  %vm344_vm0 = vcmask (!%p210_p3), 1043456  }
   0x7   : > { %213 = sbr.rel (%p210_p3) target bundleno = 495 (0x1ef), region = 36  ;;  %383 = vmatprep.mubr.bf16.mxu0 (!%p210_p3), %v803_v0  ;;  %771 = vset.pattern.permute.xlu0 (!%p210_p3), %v803_v0  ;;  %v296_v4 = vld [vmem:[%s934_s2 + $0x18] sm:$0xff] (!%p210_p3)  ;;  %v773_v10 = vld [vmem:[%s933_s1] sm:$0xff] (!%p210_p3)   ;;  %vm337_vm1 = vcmask (!%p210_p3), 64512   ;;  %v774_v11 = vld [vmem:[%s933_s1 + $0x8] sm:$0xff] (!%p210_p3)   ;;  %vm444_vm2 = vcmask (!%p210_p3), 261120  }
   0x8   : > { %772 = vset.pattern.permute.xlu1 (!%p210_p3), %v803_v0  ;;  %499 = vmatprep.mubr.bf16.mxu1 (!%p210_p3), %v803_v0  ;;  %v775_v52 = vld [vmem:[%s935_s3 + $0x8] sm:$0xff] (!%p210_p3)   ;;  %v777_v53 = vld [vmem:[%s935_s3] sm:$0xff] (!%p210_p3)   ;;  %v776_v54 = vld [vmem:[%s935_s3 + $0x10] sm:$0xff] (!%p210_p3)  }
   0x9   : > { %309 = vperm.xlu0 (!%p210_p3), %771, %v293_v1   ;;  %319 = vperm.xlu1 (!%p210_p3), %772, %v295_v3   ;;  %v778_v55 = vld [vmem:[%s935_s3 + $0x18] sm:$0xff] (!%p210_p3)  }
   0xd   : > { %314 = vperm.xlu0 (!%p210_p3), %771, %v294_v2   ;;  %324 = vperm.xlu1 (!%p210_p3), %772, %v296_v4  }
   0xe   : > { %s943_s18 = smov (!%p247_p4, %s793_s18), 1 }
   0xf   : > { %s738_s28 = sshll.u32 %s943_s18, 4  ;;  %s739_s25 = sshll.u32 %s943_s18, 6 }
  0x10   : > { %s254_s8 = scalar_lea.vmem %s932_s0, %s738_s28  ;;  %s900_s28 = scalar_lea.vmem %s936_s4, %s739_s25 }
  0x11   : > { %v288_v5 = vld [vmem:[%s254_s8 + $0x8] sm:$0xff]  ;;  %v287_v6 = vld [vmem:[%s254_s8] sm:$0xff]  ;;  %s905_s30 = scalar_lea.vmem %s937_s5, %s739_s25 }
  0x12   : > { %v306_v7 = vpack.c.bf16 %v288_v5, %v288_v5  ;;  %v305_v8 = vpack.c.bf16 %v287_v6, %v287_v6 }
  0x14   : > { %725 = vmatprep.subr.msk.bf16.mxu0 %vm344_vm0, %v306_v7  ;;  %v346_v9 = vsel %vm344_vm0, %v305_v8, 0 }
  0x15   : > { %352 = vmatpush1.bf16.msra.mxu0 %v346_v9 }
  0x18   : > { %726 = vmatmul.mubr.msk.bf16.vlgmr.msra.gmra.mrb[0].mxu0 %vm337_vm1, %v773_v10 }
  0x19   : > { %393 = vmatprep.mubr.bf16.mxu0 %v803_v0 }
  0x20   : > { %727 = vmatmul.mubr.msk.bf16.gmra.mrb[4].mxu0 %vm337_vm1, %v774_v11 }
  0x21   : > { %489 = vmatprep.mubr.bf16.mxu0 %v803_v0 }
  0x88   : > { %v310_v12 = vpop.permute.xlu0 %309  ;;  %v320_v23 = vpop.permute.xlu1 %319 }
  0x8c   : > { %v315_v14 = vpop.permute.xlu0 %314  ;;  %v325_v35 = vpop.permute.xlu1 %324 }
  0xeb   : > { %v385_v13 = vpop.f32.mrb[0].mxu0 }
  0xec   : > { %v386_v15 = vadd.f32 %v385_v13, %v310_v12  ;;  %v387_v16 = vpop.f32.mrb[1].mxu0 }
  0xed   : > { %v388_v17 = vadd.f32 %v387_v16, %v310_v12  ;;  %v389_v18 = vpop.f32.mrb[2].mxu0 }
  0xee   : > { %v404_v19 = vmul.f32 0.2, %v386_v15  ;;  %v390_v20 = vadd.f32 %v389_v18, %v315_v14  ;;  %v391_v21 = vpop.f32.mrb[3].mxu0 }
  0xef   : > { %v405_v22 = vmul.f32 0.2, %v388_v17  ;;  %v392_v24 = vadd.f32 %v391_v21, %v315_v14 }
  0xf0   : > { %v406_v25 = vmul.f32 0.2, %v390_v20  ;;  %v412_v27 = vmax.f32 %v386_v15, %v404_v19 }
  0xf1   : > { %v407_v26 = vmul.f32 0.2, %v392_v24  ;;  %v413_v29 = vmax.f32 %v388_v17, %v405_v22 }
  0xf2   : > { %v414_v28 = vmax.f32 %v390_v20, %v406_v25 }
  0xf3   : > { %v415_v30 = vmax.f32 %v392_v24, %v407_v26  ;;  %v395_v31 = vpop.f32.mrb[4].mxu0 }
  0xf4   : > { %v420_v32 = vpack.c.bf16 %v414_v28, %v412_v27  ;;  %v396_v33 = vadd.f32 %v395_v31, %v320_v23  ;;  %v397_v34 = vpop.f32.mrb[5].mxu0 }
  0xf5   : > { %v398_v36 = vadd.f32 %v397_v34, %v320_v23  ;;  %v399_v37 = vpop.f32.mrb[6].mxu0  ;;  %v421_v38 = vpack.c.bf16 %v415_v30, %v413_v29 }
  0xf6   : > { %v408_v39 = vmul.f32 0.2, %v396_v33  ;;  %v400_v40 = vadd.f32 %v399_v37, %v325_v35  ;;  %v401_v41 = vpop.f32.mrb[7].mxu0 }
  0xf7   : > { %v409_v42 = vmul.f32 0.2, %v398_v36  ;;  %v402_v43 = vadd.f32 %v401_v41, %v325_v35  ;;  %457 = vmatprep.subr.bf16.mxu0 %v421_v38  ;;  %741 = vmatprep.subr.bf16.mxu1 %v421_v38 }
  0xf8   : > { %v410_v44 = vmul.f32 0.2, %v400_v40  ;;  %458 = vmatpush1.bf16.msra.mxu0 %v420_v32  ;;  %743 = vmatpush1.bf16.msra.mxu1 %v420_v32  ;;  %v416_v46 = vmax.f32 %v396_v33, %v408_v39 }
  0xf9   : > { %v411_v45 = vmul.f32 0.2, %v402_v43  ;;  %v417_v48 = vmax.f32 %v398_v36, %v409_v42 }
  0xfa   : > { %v418_v47 = vmax.f32 %v400_v40, %v410_v44 }
  0xfb   : > { %v419_v49 = vmax.f32 %v402_v43, %v411_v45 }
  0xfc   : > { %v422_v50 = vpack.c.bf16 %v418_v47, %v416_v46 }
  0xfd   : > { %v423_v51 = vpack.c.bf16 %v419_v49, %v417_v48 }
  0xff   : > { %459 = vmatprep.subr.bf16.mxu0 %v423_v51  ;;  %742 = vmatprep.subr.bf16.mxu1 %v423_v51 }
 0x100   : > { %460 = vmatpush1.bf16.msra.mxu0 %v422_v50  ;;  %744 = vmatpush1.bf16.msra.mxu1 %v422_v50 }
 0x103   : > { %733 = vmatmul.mubr.msk.bf16.vlgmr.msra.gmra.mrb[0].mxu1 %vm444_vm2, %v775_v52  ;;  %732 = vmatmul.mubr.msk.bf16.vlgmr.msra.gmra.mrb[8].mxu0 %vm444_vm2, %v777_v53 }
 0x104   : > { %509 = vmatprep.mubr.bf16.mxu1 %v803_v0 }
 0x10b   : > { %734 = vmatmul.mubr.msk.bf16.gmra.mrb[4].mxu1 %vm444_vm2, %v776_v54 }
 0x10c   : > { %519 = vmatprep.mubr.bf16.mxu1 %v803_v0 }
 0x113   : > { %735 = vmatmul.mubr.msk.bf16.gmra.mrb[8].mxu1 %vm444_vm2, %v778_v55 }
 0x1d6   : > { %v501_v56 = vpop.f32.mrb[0].mxu1  ;;  %v491_v57 = vpop.f32.mrb[8].mxu0 }
 0x1d7   : > { %v532_v58 = vmul.f32 %v501_v56, %v501_v56  ;;  %v503_v59 = vpop.f32.mrb[1].mxu1  ;;  %v530_v60 = vmul.f32 %v491_v57, %v491_v57  ;;  %v493_v61 = vpop.f32.mrb[9].mxu0 }
 0x1d8   : > { %v540_v62 = vadd.f32 %v503_v59, %v501_v56  ;;  %v548_v63 = vmul.f32 %v503_v59, %v503_v59  ;;  %v505_v1 = vpop.f32.mrb[2].mxu1  ;;  %v538_v2 = vadd.f32 %v493_v61, %v491_v57  ;;  %v546_v3 = vmul.f32 %v493_v61, %v493_v61  ;;  %v495_v4 = vpop.f32.mrb[10].mxu0 }
 0x1d9   : > { %v533_v0 = vmul.f32 %v505_v1, %v505_v1  ;;  %v507_v5 = vpop.f32.mrb[3].mxu1  ;;  %v531_v6 = vmul.f32 %v495_v4, %v495_v4  ;;  %v497_v7 = vpop.f32.mrb[11].mxu0 }
 0x1da   : > { %v556_v8 = vadd.f32 %v548_v63, %v532_v58  ;;  %v541_v9 = vadd.f32 %v507_v5, %v505_v1  ;;  %v549_v10 = vmul.f32 %v507_v5, %v507_v5  ;;  %v554_v11 = vadd.f32 %v546_v3, %v530_v60  ;;  %580 = vst [vmem:[%s900_s28 + $0x10] sm:$0xff] %v540_v62 }
 0x1db   : > { %v539_v12 = vadd.f32 %v497_v7, %v495_v4  ;;  %v547_v13 = vmul.f32 %v497_v7, %v497_v7  ;;  %578 = vst [vmem:[%s900_s28] sm:$0xff] %v538_v2 }
 0x1dc   : > { %v557_v14 = vadd.f32 %v549_v10, %v533_v0  ;;  %604 = vst [vmem:[%s905_s30 + $0x10] sm:$0xff] %v556_v8  ;;  %581 = vst [vmem:[%s900_s28 + $0x18] sm:$0xff] %v541_v9 }
 0x1dd   : > { %v555_v15 = vadd.f32 %v547_v13, %v531_v6  ;;  %602 = vst [vmem:[%s905_s30] sm:$0xff] %v554_v11  ;;  %579 = vst [vmem:[%s900_s28 + $0x8] sm:$0xff] %v539_v12 }
 0x1de   : > { %v511_v16 = vpop.f32.mrb[4].mxu1  ;;  %605 = vst [vmem:[%s905_s30 + $0x18] sm:$0xff] %v557_v14 }
 0x1df   : > { %v534_v17 = vmul.f32 %v511_v16, %v511_v16  ;;  %v513_v18 = vpop.f32.mrb[5].mxu1  ;;  %603 = vst [vmem:[%s905_s30 + $0x8] sm:$0xff] %v555_v15 }
 0x1e0   : > { %v542_v19 = vadd.f32 %v513_v18, %v511_v16  ;;  %v550_v20 = vmul.f32 %v513_v18, %v513_v18  ;;  %v515_v21 = vpop.f32.mrb[6].mxu1 }
 0x1e1   : > { %v535_v22 = vmul.f32 %v515_v21, %v515_v21  ;;  %v517_v23 = vpop.f32.mrb[7].mxu1 }
 0x1e2   : > { %v558_v24 = vadd.f32 %v550_v20, %v534_v17  ;;  %v543_v25 = vadd.f32 %v517_v23, %v515_v21  ;;  %v551_v26 = vmul.f32 %v517_v23, %v517_v23  ;;  %582 = vst [vmem:[%s900_s28 + $0x20] sm:$0xff] %v542_v19 }
 0x1e4   : > { %v559_v27 = vadd.f32 %v551_v26, %v535_v22  ;;  %606 = vst [vmem:[%s905_s30 + $0x20] sm:$0xff] %v558_v24  ;;  %583 = vst [vmem:[%s900_s28 + $0x28] sm:$0xff] %v543_v25 }
 0x1e6   : > { %v521_v28 = vpop.f32.mrb[8].mxu1  ;;  %607 = vst [vmem:[%s905_s30 + $0x28] sm:$0xff] %v559_v27 }
 0x1e7   : > { %v536_v29 = vmul.f32 %v521_v28, %v521_v28  ;;  %v523_v30 = vpop.f32.mrb[9].mxu1 }
 0x1e8   : > { %v544_v31 = vadd.f32 %v523_v30, %v521_v28  ;;  %v552_v32 = vmul.f32 %v523_v30, %v523_v30  ;;  %v525_v33 = vpop.f32.mrb[10].mxu1 }
 0x1e9   : > { %v537_v34 = vmul.f32 %v525_v33, %v525_v33  ;;  %v527_v35 = vpop.f32.mrb[11].mxu1 }
 0x1ea   : > { %v560_v36 = vadd.f32 %v552_v32, %v536_v29  ;;  %v545_v37 = vadd.f32 %v527_v35, %v525_v33  ;;  %v553_v38 = vmul.f32 %v527_v35, %v527_v35  ;;  %584 = vst [vmem:[%s900_s28 + $0x30] sm:$0xff] %v544_v31 }
 0x1ec   : > { %v561_v39 = vadd.f32 %v553_v38, %v537_v34  ;;  %608 = vst [vmem:[%s905_s30 + $0x30] sm:$0xff] %v560_v36  ;;  %585 = vst [vmem:[%s900_s28 + $0x38] sm:$0xff] %v545_v37 }
 0x1ee   : > { %609 = vst [vmem:[%s905_s30 + $0x38] sm:$0xff] %v561_v39 }
 0x1ef PF: > { %s16_s20 = sadd.s32 1, %s801_s20   ;;  %s938_s18 = smov %s797_s19 }
 0x1f0   : > { %p13_p5 = scmp.ge.s32.totalorder %s16_s20, 4   ;;  %s939_s19 = smov %s941_s21 }
 0x1f2   :  { %15 = sbr.rel (!%p13_p5) target bundleno = 2 (0x2), region = 82 }

// kernel: pixmlp_forward.3
= control target key start
LH: loop header
LB: loop body
LE: loop exit
PB: predicated region body
PF: predicated region fallthrough
CT: control target
= control target key end

     0   :  { %s930_s21 = smov 0   ;;  %s932_s22 = smov 0   ;;  %s1055_s0 = inlined_call_operand.vmem [shape: f32[2,8,256], index: 0, kind: input, shape index: {}]   ;;  %s1056_s1 = inlined_call_operand.vmem [shape: bf16[32,8], index: 1, kind: input, shape index: {}]   ;;  %s1057_s2 = inlined_call_operand.vmem [shape: f32[32,1], index: 2, kind: input, shape index: {}]   ;;  %s1058_s3 = inlined_call_operand.vmem [shape: bf16[64,32], index: 3, kind: input, shape index: {}]   ;;  %s1059_s4 = inlined_call_operand.vmem [shape: f32[64,1], index: 4, kind: input, shape index: {}]   ;;  %s1060_s5 = inlined_call_operand.vmem [shape: f32[64,1], index: 5, kind: input, shape index: {}]   ;;  %s1061_s6 = inlined_call_operand.vmem [shape: f32[2,1,256], index: 6, kind: output, shape index: {}]  }
   0x1   :  { %s934_s23 = smov 0  }
   0x2 LB: > { %s28_s24 = sadd.s32 1, %s887_s22  ;;  %p811_p0 = scmp.ge.s32.totalorder %s891_s23, 1  ;;  %s891_s23 = sphi %s934_s23, %s16_s23   ;;  %s887_s22 = sphi %s932_s22, %s1063_s22   ;;  %s883_s21 = sphi %s930_s21, %s1062_s21  }
   0x3   : > { %p30_p1 = scmp.ge.s32.totalorder %s28_s24, 2  ;;  %p233_p2 = scmp.lt.s32.totalorder %s891_s23, 3 }
   0x5   : > { %s1065_s24 = smov (%p30_p1, %s28_s24), 0  ;;  %p234_p3 = pnand %p811_p0, %p233_p2 }
   0x6   : > { %p271_p4 = scmp.lt.s32.totalorder (!%p234_p3), %s883_s21, 1  ;;  %v893_v0 = vmov (!%p234_p3), 0   ;;  %v296_v1 = vld [vmem:[%s1057_s2] sm:$0xff] (!%p234_p3)  ;;  %v298_v2 = vld [vmem:[%s1057_s2 + $0x10] sm:$0xff] (!%p234_p3)  ;;  %v297_v3 = vld [vmem:[%s1057_s2 + $0x8] sm:$0xff] (!%p234_p3)  ;;  %vm347_vm0 = vcmask (!%p234_p3), 1043456  }
   0x7   : > { %237 = sbr.rel (%p234_p3) target bundleno = 519 (0x207), region = 44  ;;  %386 = vmatprep.mubr.bf16.mxu0 (!%p234_p3), %v893_v0  ;;  %861 = vset.pattern.permute.xlu0 (!%p234_p3), %v893_v0  ;;  %v299_v4 = vld [vmem:[%s1057_s2 + $0x18] sm:$0xff] (!%p234_p3)  ;;  %v427_v9 = vld [vmem:[%s1059_s4] sm:$0xff] (!%p234_p3)  ;;  %vm340_vm1 = vcmask (!%p234_p3), 64512   ;;  %v428_v12 = vld [vmem:[%s1059_s4 + $0x8] sm:$0xff] (!%p234_p3)  ;;  %vm495_vm2 = vcmask (!%p234_p3), 261120  }
   0x8   : > { %862 = vset.pattern.permute.xlu1 (!%p234_p3), %v893_v0  ;;  %550 = vmatprep.mubr.bf16.mxu1 (!%p234_p3), %v893_v0  ;;  %v863_v11 = vld [vmem:[%s1056_s1] sm:$0xff] (!%p234_p3)   ;;  %v429_v13 = vld [vmem:[%s1059_s4 + $0x10] sm:$0xff] (!%p234_p3)  ;;  %v430_v14 = vld [vmem:[%s1059_s4 + $0x18] sm:$0xff] (!%p234_p3) }
   0x9   : > { %312 = vperm.xlu0 (!%p234_p3), %861, %v296_v1   ;;  %322 = vperm.xlu1 (!%p234_p3), %862, %v298_v2   ;;  %v431_v15 = vld [vmem:[%s1059_s4 + $0x20] sm:$0xff] (!%p234_p3)  ;;  %v864_v16 = vld [vmem:[%s1056_s1 + $0x8] sm:$0xff] (!%p234_p3)   ;;  %v615_v20 = vld [vmem:[%s1060_s5 + $0x10] sm:$0xff] (!%p234_p3) }
   0xa   : > { %v613_v17 = vld [vmem:[%s1060_s5] sm:$0xff] (!%p234_p3)  ;;  %v614_v18 = vld [vmem:[%s1060_s5 + $0x8] sm:$0xff] (!%p234_p3)  ;;  %v433_v21 = vld [vmem:[%s1059_s4 + $0x30] sm:$0xff] (!%p234_p3) }
   0xb   : > { %v432_v19 = vld [vmem:[%s1059_s4 + $0x28] sm:$0xff] (!%p234_p3)  ;;  %v616_v22 = vld [vmem:[%s1060_s5 + $0x18] sm:$0xff] (!%p234_p3)  ;;  %v617_v24 = vld [vmem:[%s1060_s5 + $0x20] sm:$0xff] (!%p234_p3) }
   0xc   : > { %v434_v23 = vld [vmem:[%s1059_s4 + $0x38] sm:$0xff] (!%p234_p3)  ;;  %v618_v25 = vld [vmem:[%s1060_s5 + $0x28] sm:$0xff] (!%p234_p3)  ;;  %v619_v26 = vld [vmem:[%s1060_s5 + $0x30] sm:$0xff] (!%p234_p3) }
   0xd   : > { %317 = vperm.xlu0 (!%p234_p3), %861, %v297_v3   ;;  %327 = vperm.xlu1 (!%p234_p3), %862, %v299_v4   ;;  %v620_v27 = vld [vmem:[%s1060_s5 + $0x38] sm:$0xff] (!%p234_p3) }
   0xe   : > { %s1067_s21 = smov (!%p271_p4, %s883_s21), 1 }
   0xf   : > { %s830_s29 = sshll.u32 %s1067_s21, 4  ;;  %s814_s17 = sshll.u32 %s1067_s21, 1 }
  0x10   : > { %s278_s10 = scalar_lea.vmem %s1055_s0, %s830_s29  ;;  %s287_s20 = scalar_lea.vmem %s1061_s6, %s814_s17 }
  0x11   : > { %v291_v5 = vld [vmem:[%s278_s10 + $0x8] sm:$0xff]  ;;  %v290_v6 = vld [vmem:[%s278_s10] sm:$0xff]  ;;  %437 = vperm.xlu0 %861, %v427_v9   ;;  %442 = vperm.xlu1 %862, %v428_v12  }
  0x12   : > { %v309_v7 = vpack.c.bf16 %v291_v5, %v291_v5  ;;  %v308_v8 = vpack.c.bf16 %v290_v6, %v290_v6  ;;  %v865_v5 = vld [vmem:[%s1058_s3] sm:$0xff]   ;;  %v866_v6 = vld [vmem:[%s1058_s3 + $0x8] sm:$0xff]  }
  0x14   : > { %817 = vmatprep.subr.msk.bf16.mxu0 %vm347_vm0, %v309_v7  ;;  %v349_v10 = vsel %vm347_vm0, %v308_v8, 0  ;;  %v867_v7 = vld [vmem:[%s1058_s3 + $0x10] sm:$0xff]   ;;  %v868_v8 = vld [vmem:[%s1058_s3 + $0x18] sm:$0xff]  }
  0x15   : > { %355 = vmatpush1.bf16.msra.mxu0 %v349_v10  ;;  %447 = vperm.xlu0 %861, %v429_v13  }
  0x16   : > { %452 = vperm.xlu1 %862, %v430_v14  }
  0x18   : > { %818 = vmatmul.mubr.msk.bf16.vlgmr.msra.gmra.mrb[0].mxu0 %vm340_vm1, %v863_v11 }
  0x19   : > { %396 = vmatprep.mubr.bf16.mxu0 %v893_v0  ;;  %457 = vperm.xlu0 %861, %v431_v15  }
  0x1a   : > { %623 = vperm.xlu1 %862, %v613_v17  }
  0x1d   : > { %628 = vperm.xlu0 %861, %v614_v18  }
  0x1e   : > { %462 = vperm.xlu1 %862, %v432_v19  }
  0x20   : > { %819 = vmatmul.mubr.msk.bf16.gmra.mrb[4].mxu0 %vm340_vm1, %v864_v16 }
  0x21   : > { %540 = vmatprep.mubr.bf16.mxu0 %v893_v0  ;;  %633 = vperm.xlu0 %861, %v615_v20  }
  0x22   : > { %467 = vperm.xlu1 %862, %v433_v21  }
  0x25   : > { %638 = vperm.xlu0 %861, %v616_v22  }
  0x26   : > { %472 = vperm.xlu1 %862, %v434_v23  }
  0x29   : > { %643 = vperm.xlu0 %861, %v617_v24  }
  0x2a   : > { %648 = vperm.xlu1 %862, %v618_v25  }
  0x2d   : > { %653 = vperm.xlu0 %861, %v619_v26  }
  0x2e   : > { %658 = vperm.xlu1 %862, %v620_v27  }
  0x88   : > { %v313_v28 = vpop.permute.xlu0 %312  ;;  %v323_v38 = vpop.permute.xlu1 %322 }
  0x8c   : > { %v318_v32 = vpop.permute.xlu0 %317  ;;  %v328_v51 = vpop.permute.xlu1 %327 }
  0x90   : > { %v438_v9 = vpop.permute.xlu0 %437  ;;  %v443_v10 = vpop.permute.xlu1 %442 }
  0x94   : > { %v448_v11 = vpop.permute.xlu0 %447 }
  0x95   : > { %v453_v12 = vpop.permute.xlu1 %452 }
  0x98   : > { %v458_v13 = vpop.permute.xlu0 %457 }
  0x99   : > { %v624_v14 = vpop.permute.xlu1 %623 }
  0x9c   : > { %v629_v15 = vpop.permute.xlu0 %628 }
  0x9d   : > { %v463_v16 = vpop.permute.xlu1 %462 }
  0xa0   : > { %v634_v17 = vpop.permute.xlu0 %633 }
  0xeb   : > { %v388_v29 = vpop.f32.mrb[0].mxu0 }
  0xec   : > { %v389_v30 = vadd.f32 %v388_v29, %v313_v28  ;;  %v390_v31 = vpop.f32.mrb[1].mxu0 }
  0xed   : > { %v391_v33 = vadd.f32 %v390_v31, %v313_v28  ;;  %v392_v34 = vpop.f32.mrb[2].mxu0 }
  0xee   : > { %v407_v35 = vmul.f32 0.2, %v389_v30  ;;  %v393_v36 = vadd.f32 %v392_v34, %v318_v32  ;;  %v394_v37 = vpop.f32.mrb[3].mxu0 }
  0xef   : > { %v408_v39 = vmul.f32 0.2, %v391_v33  ;;  %v395_v40 = vadd.f32 %v394_v37, %v318_v32 }
  0xf0   : > { %v409_v41 = vmul.f32 0.2, %v393_v36  ;;  %v415_v43 = vmax.f32 %v389_v30, %v407_v35 }
  0xf1   : > { %v410_v42 = vmul.f32 0.2, %v395_v40  ;;  %v416_v45 = vmax.f32 %v391_v33, %v408_v39  ;;  %v468_v33 = vpop.permute.xlu1 %467 }
  0xf2   : > { %v417_v44 = vmax.f32 %v393_v36, %v409_v41 }
  0xf3   : > { %v418_v46 = vmax.f32 %v395_v40, %v410_v42  ;;  %v398_v47 = vpop.f32.mrb[4].mxu0 }
  0xf4   : > { %v423_v48 = vpack.c.bf16 %v417_v44, %v415_v43  ;;  %v399_v49 = vadd.f32 %v398_v47, %v323_v38  ;;  %v400_v50 = vpop.f32.mrb[5].mxu0 }
  0xf5   : > { %v401_v52 = vadd.f32 %v400_v50, %v323_v38  ;;  %v402_v53 = vpop.f32.mrb[6].mxu0  ;;  %v424_v54 = vpack.c.bf16 %v418_v46, %v416_v45  ;;  %v639_v46 = vpop.permute.xlu0 %638 }
  0xf6   : > { %v411_v55 = vmul.f32 0.2, %v399_v49  ;;  %v403_v56 = vadd.f32 %v402_v53, %v328_v51  ;;  %v404_v57 = vpop.f32.mrb[7].mxu0 }
  0xf7   : > { %v412_v58 = vmul.f32 0.2, %v401_v52  ;;  %v405_v59 = vadd.f32 %v404_v57, %v328_v51  ;;  %508 = vmatprep.subr.bf16.mxu0 %v424_v54  ;;  %831 = vmatprep.subr.bf16.mxu1 %v424_v54 }
  0xf8   : > { %v413_v60 = vmul.f32 0.2, %v403_v56  ;;  %509 = vmatpush1.bf16.msra.mxu0 %v423_v48  ;;  %833 = vmatpush1.bf16.msra.mxu1 %v423_v48  ;;  %v419_v62 = vmax.f32 %v399_v49, %v411_v55  ;;  %v473_v55 = vpop.permute.xlu1 %472 }
  0xf9   : > { %v414_v61 = vmul.f32 0.2, %v405_v59  ;;  %v420_v1 = vmax.f32 %v401_v52, %v412_v58 }
  0xfa   : > { %v421_v63 = vmax.f32 %v403_v56, %v413_v60 }
  0xfb   : > { %v422_v2 = vmax.f32 %v405_v59, %v414_v61 }
  0xfc   : > { %v425_v3 = vpack.c.bf16 %v421_v63, %v419_v62 }
  0xfd   : > { %v426_v4 = vpack.c.bf16 %v422_v2, %v420_v1 }
  0xff   : > { %510 = vmatprep.subr.bf16.mxu0 %v426_v4  ;;  %832 = vmatprep.subr.bf16.mxu1 %v426_v4 }
 0x100   : > { %511 = vmatpush1.bf16.msra.mxu0 %v425_v3  ;;  %834 = vmatpush1.bf16.msra.mxu1 %v425_v3 }
 0x103   : > { %824 = vmatmul.mubr.msk.bf16.vlgmr.msra.gmra.mrb[8].mxu0 %vm495_vm2, %v865_v5  ;;  %825 = vmatmul.mubr.msk.bf16.vlgmr.msra.gmra.mrb[0].mxu1 %vm495_vm2, %v866_v6 }
 0x104   : > { %560 = vmatprep.mubr.bf16.mxu1 %v893_v0 }
 0x10b   : > { %826 = vmatmul.mubr.msk.bf16.gmra.mrb[4].mxu1 %vm495_vm2, %v867_v7 }
 0x10c   : > { %570 = vmatprep.mubr.bf16.mxu1 %v893_v0 }
 0x113   : > { %827 = vmatmul.mubr.msk.bf16.gmra.mrb[8].mxu1 %vm495_vm2, %v868_v8 }
 0x1d6   : > { %v542_v18 = vpop.f32.mrb[8].mxu0  ;;  %v552_v19 = vpop.f32.mrb[0].mxu1 }
 0x1d7   : > { %v543_v20 = vadd.f32 %v542_v18, %v438_v9  ;;  %v553_v21 = vadd.f32 %v552_v19, %v448_v11  ;;  %v544_v22 = vpop.f32.mrb[9].mxu0  ;;  %v554_v0 = vpop.f32.mrb[1].mxu1 }
 0x1d8   : > { %v545_v23 = vadd.f32 %v544_v22, %v438_v9  ;;  %v555_v24 = vadd.f32 %v554_v0, %v448_v11  ;;  %v546_v25 = vpop.f32.mrb[10].mxu0  ;;  %v556_v26 = vpop.f32.mrb[2].mxu1 }
 0x1d9   : > { %v581_v27 = vmul.f32 0.2, %v543_v20  ;;  %v585_v28 = vmul.f32 0.2, %v553_v21  ;;  %v547_v29 = vadd.f32 %v546_v25, %v443_v10  ;;  %v557_v30 = vadd.f32 %v556_v26, %v453_v12  ;;  %v548_v31 = vpop.f32.mrb[11].mxu0  ;;  %v558_v32 = vpop.f32.mrb[3].mxu1 }
 0x1da   : > { %v582_v34 = vmul.f32 0.2, %v545_v23  ;;  %v586_v35 = vmul.f32 0.2, %v555_v24  ;;  %v549_v36 = vadd.f32 %v548_v31, %v443_v10  ;;  %v559_v37 = vadd.f32 %v558_v32, %v453_v12  ;;  %v644_v11 = vpop.permute.xlu0 %643 }
 0x1db   : > { %v597_v38 = vmax.f32 %v543_v20, %v581_v27  ;;  %v583_v39 = vmul.f32 0.2, %v547_v29  ;;  %v587_v40 = vmul.f32 0.2, %v557_v30  ;;  %v601_v44 = vmax.f32 %v553_v21, %v585_v28  ;;  %v649_v21 = vpop.permute.xlu1 %648 }
 0x1dc   : > { %v598_v41 = vmax.f32 %v545_v23, %v582_v34  ;;  %v584_v42 = vmul.f32 0.2, %v549_v36  ;;  %v588_v43 = vmul.f32 0.2, %v559_v37  ;;  %v602_v47 = vmax.f32 %v555_v24, %v586_v35 }
 0x1dd   : > { %v599_v45 = vmax.f32 %v547_v29, %v583_v39  ;;  %v661_v50 = vmul.f32 %v624_v14, %v597_v38  ;;  %v603_v52 = vmax.f32 %v557_v30, %v587_v40  ;;  %v665_v61 = vmul.f32 %v634_v17, %v601_v44 }
 0x1de   : > { %v600_v48 = vmax.f32 %v549_v36, %v584_v42  ;;  %v562_v49 = vpop.f32.mrb[4].mxu1  ;;  %v662_v56 = vmul.f32 %v624_v14, %v598_v41  ;;  %v604_v58 = vmax.f32 %v559_v37, %v588_v43  ;;  %v666_v3 = vmul.f32 %v634_v17, %v602_v47  ;;  %v654_v41 = vpop.permute.xlu0 %653 }
 0x1df   : > { %v663_v51 = vmul.f32 %v629_v15, %v599_v45  ;;  %v563_v53 = vadd.f32 %v562_v49, %v458_v13  ;;  %v564_v54 = vpop.f32.mrb[5].mxu1  ;;  %v667_v7 = vmul.f32 %v639_v46, %v603_v52 }
 0x1e0   : > { %v664_v57 = vmul.f32 %v629_v15, %v600_v48  ;;  %v565_v59 = vadd.f32 %v564_v54, %v458_v13  ;;  %v566_v60 = vpop.f32.mrb[6].mxu1  ;;  %v668_v12 = vmul.f32 %v639_v46, %v604_v58  ;;  %v659_v46 = vpop.permute.xlu1 %658  ;;  %v894_v58 = vmov 1966171168  }
 0x1e1   : > { %v677_v62 = vadd.f32 %v663_v51, %v661_v50  ;;  %v589_v63 = vmul.f32 0.2, %v563_v53  ;;  %v567_v1 = vadd.f32 %v566_v60, %v463_v16  ;;  %v568_v2 = vpop.f32.mrb[7].mxu1  ;;  %v709_v60 = vlaneseq }
 0x1e2   : > { %v690_v4 = vadd.f32 %v664_v57, %v662_v56  ;;  %v590_v5 = vmul.f32 0.2, %v565_v59  ;;  %v569_v6 = vadd.f32 %v568_v2, %v463_v16 }
 0x1e3   : > { %v678_v8 = vadd.f32 %v677_v62, %v665_v61  ;;  %v605_v9 = vmax.f32 %v563_v53, %v589_v63  ;;  %v591_v10 = vmul.f32 0.2, %v567_v1  ;;  %vm723_vm3 = vcmp.lt.s32.totalorder %v709_v60, 256 }
 0x1e4   : > { %v691_v14 = vadd.f32 %v690_v4, %v666_v3  ;;  %v606_v15 = vmax.f32 %v565_v59, %v590_v5  ;;  %v592_v18 = vmul.f32 0.2, %v569_v6  ;;  %v707_v59 = vunpack.c.l.s4 %v894_v58 }
 0x1e5   : > { %v679_v13 = vadd.f32 %v678_v8, %v667_v7  ;;  %v669_v19 = vmul.f32 %v644_v11, %v605_v9  ;;  %v607_v20 = vmax.f32 %v567_v1, %v591_v10  ;;  %v710_v3 = vshrl.u32 %v709_v60, 7 }
 0x1e6   : > { %v692_v22 = vadd.f32 %v691_v14, %v668_v12  ;;  %v670_v0 = vmul.f32 %v644_v11, %v606_v15  ;;  %v608_v23 = vmax.f32 %v569_v6, %v592_v18  ;;  %v572_v17 = vpop.f32.mrb[8].mxu1  ;;  %v708_v2 = vunpack.c.0.s8 %v707_v59 }
 0x1e7   : > { %v680_v24 = vadd.f32 %v679_v13, %v669_v19  ;;  %v671_v25 = vmul.f32 %v649_v21, %v607_v20  ;;  %v573_v16 = vadd.f32 %v572_v17, %v468_v33  ;;  %v574_v26 = vpop.f32.mrb[9].mxu1 }
 0x1e8   : > { %v693_v27 = vadd.f32 %v692_v22, %v670_v0  ;;  %v672_v28 = vmul.f32 %v649_v21, %v608_v23  ;;  %v575_v29 = vadd.f32 %v574_v26, %v468_v33  ;;  %v576_v30 = vpop.f32.mrb[10].mxu1  ;;  %v711_v8 = vsub.s32 %v708_v2, %v710_v3 }
 0x1e9   : > { %v681_v31 = vadd.f32 %v680_v24, %v671_v25  ;;  %v593_v32 = vmul.f32 0.2, %v573_v16  ;;  %v577_v34 = vadd.f32 %v576_v30, %v473_v55  ;;  %v578_v35 = vpop.f32.mrb[11].mxu1 }
 0x1ea   : > { %v694_v36 = vadd.f32 %v693_v27, %v672_v28  ;;  %v594_v37 = vmul.f32 0.2, %v575_v29  ;;  %v579_v38 = vadd.f32 %v578_v35, %v473_v55 }
 0x1eb   : > { %v609_v39 = vmax.f32 %v573_v16, %v593_v32  ;;  %v595_v40 = vmul.f32 0.2, %v577_v34 }
 0x1ec   : > { %v610_v42 = vmax.f32 %v575_v29, %v594_v37  ;;  %v596_v43 = vmul.f32 0.2, %v579_v38 }
 0x1ed   : > { %v673_v44 = vmul.f32 %v654_v41, %v609_v39  ;;  %v611_v45 = vmax.f32 %v577_v34, %v595_v40 }
 0x1ee   : > { %v674_v47 = vmul.f32 %v654_v41, %v610_v42  ;;  %v612_v48 = vmax.f32 %v579_v38, %v596_v43 }
 0x1ef   : > { %v682_v49 = vadd.f32 %v681_v31, %v673_v44  ;;  %v675_v33 = vmul.f32 %v659_v46, %v611_v45 }
 0x1f0   : > { %v695_v50 = vadd.f32 %v694_v36, %v674_v47  ;;  %v676_v51 = vmul.f32 %v659_v46, %v612_v48 }
 0x1f1   : > { %v683_v52 = vadd.f32 %v682_v49, %v675_v33 }
 0x1f2   : > { %v696_v53 = vadd.f32 %v695_v50, %v676_v51 }
 0x1f3   : > { %v684_v54 = vrot.slane %v683_v52, 4 }
 0x1f4   : > { %v697_v56 = vrot.slane %v696_v53, 4 }
 0x1f5   : > { %v685_v57 = vadd.f32 %v684_v54, %v683_v52 }
 0x1f6   : > { %v698_v55 = vadd.f32 %v697_v56, %v696_v53 }
 0x1f7   : > { %v686_v61 = vrot.slane %v685_v57, 2 }
 0x1f8   : > { %v699_v62 = vrot.slane %v698_v55, 2 }
 0x1f9   : > { %v687_v63 = vadd.f32 %v686_v61, %v685_v57 }
 0x1fa   : > { %v700_v1 = vadd.f32 %v699_v62, %v698_v55 }
 0x1fb   : > { %v688_v4 = vrot.slane %v687_v63, 1 }
 0x1fc   : > { %v701_v5 = vrot.slane %v700_v1, 1 }
 0x1fd   : > { %v689_v6 = vadd.f32 %v688_v4, %v687_v63 }
 0x1fe   : > { %v702_v7 = vadd.f32 %v701_v5, %v700_v1 }
 0x200   : > { %v705_v9 = vcombine.low %v689_v6, %v702_v7 }
 0x202   : > { %v712_v10 = vrot.slane %v705_v9, %v711_v8 }
 0x204   : > { %v719_v11 = vrot.slane %v712_v10, %v711_v8 }
 0x206   : > { %725 = vst.msk [vmem:[%s287_s20] sm:$0x3] %vm723_vm3, %v719_v11 }
 0x207 PF: > { %s16_s23 = sadd.s32 1, %s891_s23   ;;  %s1062_s21 = smov %s887_s22 }
 0x208   : > { %p13_p5 = scmp.ge.s32.totalorder %s16_s23, 4   ;;  %s1063_s22 = smov %s1065_s24 }
 0x20a   :  { %15 = sbr.rel (!%p13_p5) target bundleno = 2 (0x2), region = 74 }

</bundles_post_ra>
